<compile_context>
chip_gen: v5e
topology: v5e:2x2
jax: 0.10.0
libtpu: 0.0.40
codegen_flags: <defaults>
</compile_context>

<pallas_src>
import functools

import jax
import jax.numpy as jnp
from jax.experimental import pallas as pl
from jax.experimental.pallas import tpu as pltpu


# ----------------------------------------------------------------------------
# Kernel: one GRU time step per grid iteration; hidden state lives in the
# resident final-hidden output block (constant block index across the grid).
# ----------------------------------------------------------------------------
def gru_encoder_kernel(
    x_ref,                                   # (1, B, I)   current time step
    wih_r_ref, wih_z_ref, wih_n_ref,         # (I, Hp)     per-gate, pre-transposed
    whh_r_ref, whh_z_ref, whh_n_ref,         # (Hp, Hp)    per-gate, pre-transposed
    b_r_ref, b_z_ref,                        # (1, Hp)     b_ih + b_hh (r / z gates)
    b_in_ref, b_hn_ref,                      # (1, Hp)     n-gate biases kept separate
    out_ref,                                 # (1, B, Hp)  hidden at this step
    h_ref,                                   # (B, Hp)     resident hidden carry / final hidden
):
    t = pl.program_id(0)

    @pl.when(t == 0)
    def _():
        # torch.nn.GRU default initial hidden state is zeros.
        h_ref[...] = jnp.zeros_like(h_ref)

    x = x_ref[0]          # (B, I)
    h = h_ref[...]        # (B, Hp)

    # Per-gate matmuls (MXU); no in-lane gate slicing afterwards.
    gi_r = jnp.dot(x, wih_r_ref[...], preferred_element_type=jnp.float32)
    gi_z = jnp.dot(x, wih_z_ref[...], preferred_element_type=jnp.float32)
    gi_n = jnp.dot(x, wih_n_ref[...], preferred_element_type=jnp.float32)
    gh_r = jnp.dot(h, whh_r_ref[...], preferred_element_type=jnp.float32)
    gh_z = jnp.dot(h, whh_z_ref[...], preferred_element_type=jnp.float32)
    gh_n = jnp.dot(h, whh_n_ref[...], preferred_element_type=jnp.float32)

    # PyTorch GRU gate order: r, z, n.
    r = jax.nn.sigmoid(gi_r + gh_r + b_r_ref[...])
    z = jax.nn.sigmoid(gi_z + gh_z + b_z_ref[...])
    n = jnp.tanh(gi_n + b_in_ref[...] + r * (gh_n + b_hn_ref[...]))
    h_new = (1.0 - z) * n + z * h            # (B, Hp)

    h_ref[...] = h_new                       # carry to next step / final hidden
    out_ref[0] = h_new                       # per-step output (lane-dense store)


# ----------------------------------------------------------------------------
# Parameters (PyTorch-shaped) and one-time kernel-friendly preparation.
# ----------------------------------------------------------------------------
def init_params(key, input_size, hidden_size):
    """torch.nn.GRU-shaped params, uniform(-1/sqrt(H), 1/sqrt(H))."""
    H, I = hidden_size, input_size
    ks = jax.random.split(key, 4)
    bound = 1.0 / jnp.sqrt(jnp.float32(H))

    def u(k, shape):
        return jax.random.uniform(k, shape, jnp.float32, -bound, bound)

    return {
        "w_ih": u(ks[0], (3 * H, I)),   # weight_ih_l0
        "w_hh": u(ks[1], (3 * H, H)),   # weight_hh_l0
        "b_ih": u(ks[2], (3 * H,)),     # bias_ih_l0
        "b_hh": u(ks[3], (3 * H,)),     # bias_hh_l0
    }


def prepare_params(params, hidden_size, lane_multiple=128):
    """One-time: per-gate split, transpose to (in, out), pad lanes to Hp."""
    H = hidden_size
    Hp = ((H + lane_multiple - 1) // lane_multiple) * lane_multiple
    w_ih, w_hh = params["w_ih"], params["w_hh"]
    b_ih, b_hh = params["b_ih"], params["b_hh"]

    def pad_cols(a):                     # (*, H) -> (*, Hp)
        return jnp.pad(a, ((0, 0), (0, Hp - a.shape[1])))

    def pad_square(a):                   # (H, H) -> (Hp, Hp), zero rows & cols
        return jnp.pad(a, ((0, Hp - a.shape[0]), (0, Hp - a.shape[1])))

    def gate(w, g):                      # g-th (H, in) block, transposed
        return w[g * H:(g + 1) * H, :].T

    pp = {
        "wih_r": pad_cols(gate(w_ih, 0)),
        "wih_z": pad_cols(gate(w_ih, 1)),
        "wih_n": pad_cols(gate(w_ih, 2)),
        "whh_r": pad_square(gate(w_hh, 0)),
        "whh_z": pad_square(gate(w_hh, 1)),
        "whh_n": pad_square(gate(w_hh, 2)),
        "b_r":  pad_cols((b_ih[0:H] + b_hh[0:H]).reshape(1, H)),
        "b_z":  pad_cols((b_ih[H:2 * H] + b_hh[H:2 * H]).reshape(1, H)),
        "b_in": pad_cols(b_ih[2 * H:3 * H].reshape(1, H)),
        "b_hn": pad_cols(b_hh[2 * H:3 * H].reshape(1, H)),
    }
    return pp


# ----------------------------------------------------------------------------
# Forward wrapper: one pallas_call over the whole sequence.
# ----------------------------------------------------------------------------
@functools.partial(jax.jit, static_argnames=("hidden_size",))
def encoder_forward(x, pp, *, hidden_size):
    """x: (L, B, I) float32  ->  (output (L,B,H), hidden (1,B,H))."""
    L, B, I = x.shape
    Hp = pp["whh_r"].shape[0]
    H = hidden_size

    def const_spec(shape):
        nd = len(shape)
        return pl.BlockSpec(shape, lambda t, _nd=nd: (0,) * _nd)

    weight_order = ("wih_r", "wih_z", "wih_n", "whh_r", "whh_z", "whh_n",
                    "b_r", "b_z", "b_in", "b_hn")
    weight_args = [pp[k] for k in weight_order]

    in_specs = [pl.BlockSpec((1, B, I), lambda t: (t, 0, 0))]          # x: one step/iter
    in_specs += [const_spec(w.shape) for w in weight_args]             # weights resident

    out_specs = (
        pl.BlockSpec((1, B, Hp), lambda t: (t, 0, 0)),                 # per-step output
        pl.BlockSpec((B, Hp), lambda t: (0, 0)),                       # resident hidden carry
    )

    weights_elems = 3 * I * Hp + 3 * Hp * Hp + 4 * Hp
    cost = pl.CostEstimate(
        flops=2 * L * B * (3 * I * Hp + 3 * Hp * Hp),
        transcendentals=3 * L * B * Hp,
        bytes_accessed=4 * (L * B * I + weights_elems + L * B * Hp + B * Hp),
    )

    out_p, h_final_p = pl.pallas_call(
        gru_encoder_kernel,
        out_shape=(jax.ShapeDtypeStruct((L, B, Hp), jnp.float32),
                   jax.ShapeDtypeStruct((B, Hp), jnp.float32)),
        grid=(L,),
        in_specs=in_specs,
        out_specs=out_specs,
        compiler_params=pltpu.CompilerParams(
            dimension_semantics=("arbitrary",)),                       # time is sequential
        cost_estimate=cost,
    )(x, *weight_args)

    # Strip lane padding (layout plumbing only; padded lanes are exact zeros).
    output = out_p[:, :, :H]                 # (L, B, H)
    hidden = h_final_p[None, :, :H]          # (1, B, H)
    return output, hidden


# ----------------------------------------------------------------------------
# Pure-JAX reference mirroring torch.nn.GRU (1 layer, seq-first, h0 = 0).
# ----------------------------------------------------------------------------
def reference_forward(x, params):
    L, B, I = x.shape
    H = params["w_hh"].shape[1]
    w_ih, w_hh = params["w_ih"], params["w_hh"]
    b_ih, b_hh = params["b_ih"], params["b_hh"]

    def step(h, x_t):
        gi = x_t @ w_ih.T + b_ih
        gh = h @ w_hh.T + b_hh
        r = jax.nn.sigmoid(gi[:, 0:H] + gh[:, 0:H])
        z = jax.nn.sigmoid(gi[:, H:2 * H] + gh[:, H:2 * H])
        n = jnp.tanh(gi[:, 2 * H:3 * H] + r * gh[:, 2 * H:3 * H])
        h_new = (1.0 - z) * n + z * h
        return h_new, h_new

    h0 = jnp.zeros((B, H), jnp.float32)
    h_final, outs = jax.lax.scan(step, h0, x)
    return outs, h_final[None]


if __name__ == "__main__":
    # Small shapes consistent with the module's forward.
    L = 8     # sequence length
    B = 2     # batch
    I = 4     # input_size
    H = 32    # hidden_size

    key = jax.random.PRNGKey(0)
    k_x, k_p = jax.random.split(key)

    x = jax.random.normal(k_x, (L, B, I), jnp.float32)
    params = init_params(k_p, I, H)
    pp = prepare_params(params, H)           # one-time weight prep (transposed/split/padded)

    out, hidden = encoder_forward(x, pp, hidden_size=H)
    out = jax.block_until_ready(out)
    hidden = jax.block_until_ready(hidden)

    ref_out, ref_hidden = reference_forward(x, params)
    assert out.shape == (L, B, H) and hidden.shape == (1, B, H)
    assert jnp.allclose(out, ref_out, atol=1e-5, rtol=1e-5)
    assert jnp.allclose(hidden, ref_hidden, atol=1e-5, rtol=1e-5)

    print("KERNEL_OK")
</pallas_src>

<mosaic_0001>
module attributes {stable_mosaic.version = 11 : i64} {
  func.func @gru_encoder_kernel(%arg0: i32, %arg1: memref<1x2x4xf32, #tpu.memory_space<vmem>>, %arg2: memref<4x128xf32, #tpu.memory_space<vmem>>, %arg3: memref<4x128xf32, #tpu.memory_space<vmem>>, %arg4: memref<4x128xf32, #tpu.memory_space<vmem>>, %arg5: memref<128x128xf32, #tpu.memory_space<vmem>>, %arg6: memref<128x128xf32, #tpu.memory_space<vmem>>, %arg7: memref<128x128xf32, #tpu.memory_space<vmem>>, %arg8: memref<1x128xf32, #tpu.memory_space<vmem>>, %arg9: memref<1x128xf32, #tpu.memory_space<vmem>>, %arg10: memref<1x128xf32, #tpu.memory_space<vmem>>, %arg11: memref<1x128xf32, #tpu.memory_space<vmem>>, %arg12: memref<1x2x128xf32, #tpu.memory_space<vmem>>, %arg13: memref<2x128xf32, #tpu.memory_space<vmem>>) attributes {dimension_semantics = [#tpu.dimension_semantics<arbitrary>], iteration_bounds = array<i64: 8>, scalar_prefetch = 0 : i64, scratch_operands = 0 : i64, tpu.core_type = #tpu.core_type<tc>, window_params = [{transform_indices = @transform_0, window_bounds = array<i64: 1, 2, 4>}, {pipeline_mode = #tpu.pipeline_mode<synchronous>, transform_indices = @transform_1, window_bounds = array<i64: 4, 128>}, {pipeline_mode = #tpu.pipeline_mode<synchronous>, transform_indices = @transform_2, window_bounds = array<i64: 4, 128>}, {pipeline_mode = #tpu.pipeline_mode<synchronous>, transform_indices = @transform_3, window_bounds = array<i64: 4, 128>}, {pipeline_mode = #tpu.pipeline_mode<synchronous>, transform_indices = @transform_4, window_bounds = array<i64: 128, 128>}, {pipeline_mode = #tpu.pipeline_mode<synchronous>, transform_indices = @transform_5, window_bounds = array<i64: 128, 128>}, {pipeline_mode = #tpu.pipeline_mode<synchronous>, transform_indices = @transform_6, window_bounds = array<i64: 128, 128>}, {pipeline_mode = #tpu.pipeline_mode<synchronous>, transform_indices = @transform_7, window_bounds = array<i64: 1, 128>}, {pipeline_mode = #tpu.pipeline_mode<synchronous>, transform_indices = @transform_8, window_bounds = array<i64: 1, 128>}, {pipeline_mode = #tpu.pipeline_mode<synchronous>, transform_indices = @transform_9, window_bounds = array<i64: 1, 128>}, {pipeline_mode = #tpu.pipeline_mode<synchronous>, transform_indices = @transform_10, window_bounds = array<i64: 1, 128>}, {transform_indices = @transform_11, window_bounds = array<i64: 1, 2, 128>}, {pipeline_mode = #tpu.pipeline_mode<synchronous>, transform_indices = @transform_12, window_bounds = array<i64: 2, 128>}]} {
    %c0_i32 = arith.constant 0 : i32
    %0 = arith.cmpi eq, %arg0, %c0_i32 : i32
    %1 = arith.extui %0 : i1 to i32
    %c0_i32_0 = arith.constant 0 : i32
    %2 = arith.cmpi ne, %1, %c0_i32_0 : i32
    scf.if %2 {
      %cst_38 = arith.constant 0.000000e+00 : f32
      %54 = vector.broadcast %cst_38 : f32 to vector<2x128xf32>
      %c0_39 = arith.constant 0 : index
      %c0_40 = arith.constant 0 : index
      %55 = vector.load %arg13[%c0_39, %c0_40] : memref<2x128xf32, #tpu.memory_space<vmem>>, vector<2x128xf32>
      tpu.vector_store %arg13[%c0_39, %c0_40], %54 {strides = array<i32>} : memref<2x128xf32, #tpu.memory_space<vmem>>, vector<2x128xf32>,
    } else {
    }
    %c0 = arith.constant 0 : index
    %c0_1 = arith.constant 0 : index
    %c0_2 = arith.constant 0 : index
    %3 = vector.load %arg1[%c0, %c0_1, %c0_2] : memref<1x2x4xf32, #tpu.memory_space<vmem>>, vector<1x2x4xf32>
    %4 = vector.shape_cast %3 : vector<1x2x4xf32> to vector<2x4xf32>
    %c0_3 = arith.constant 0 : index
    %c0_4 = arith.constant 0 : index
    %5 = vector.load %arg13[%c0_3, %c0_4] : memref<2x128xf32, #tpu.memory_space<vmem>>, vector<2x128xf32>
    %c0_5 = arith.constant 0 : index
    %c0_6 = arith.constant 0 : index
    %6 = vector.load %arg2[%c0_5, %c0_6] : memref<4x128xf32, #tpu.memory_space<vmem>>, vector<4x128xf32>
    %cst = arith.constant dense<0.000000e+00> : vector<2x128xf32>
    %7 = tpu.matmul %4, %6, %cst {dimension_numbers = #tpu.dot_dimension_numbers<[1], [0], [0], [1], [0, 0, 1, 1], [], []>} : vector<2x4xf32>, vector<4x128xf32>, vector<2x128xf32> -> vector<2x128xf32>
    %c0_7 = arith.constant 0 : index
    %c0_8 = arith.constant 0 : index
    %8 = vector.load %arg3[%c0_7, %c0_8] : memref<4x128xf32, #tpu.memory_space<vmem>>, vector<4x128xf32>
    %cst_9 = arith.constant dense<0.000000e+00> : vector<2x128xf32>
    %9 = tpu.matmul %4, %8, %cst_9 {dimension_numbers = #tpu.dot_dimension_numbers<[1], [0], [0], [1], [0, 0, 1, 1], [], []>} : vector<2x4xf32>, vector<4x128xf32>, vector<2x128xf32> -> vector<2x128xf32>
    %c0_10 = arith.constant 0 : index
    %c0_11 = arith.constant 0 : index
    %10 = vector.load %arg4[%c0_10, %c0_11] : memref<4x128xf32, #tpu.memory_space<vmem>>, vector<4x128xf32>
    %cst_12 = arith.constant dense<0.000000e+00> : vector<2x128xf32>
    %11 = tpu.matmul %4, %10, %cst_12 {dimension_numbers = #tpu.dot_dimension_numbers<[1], [0], [0], [1], [0, 0, 1, 1], [], []>} : vector<2x4xf32>, vector<4x128xf32>, vector<2x128xf32> -> vector<2x128xf32>
    %c0_13 = arith.constant 0 : index
    %c0_14 = arith.constant 0 : index
    %12 = vector.load %arg5[%c0_13, %c0_14] : memref<128x128xf32, #tpu.memory_space<vmem>>, vector<128x128xf32>
    %cst_15 = arith.constant dense<0.000000e+00> : vector<2x128xf32>
    %13 = tpu.matmul %5, %12, %cst_15 {dimension_numbers = #tpu.dot_dimension_numbers<[1], [0], [0], [1], [0, 0, 1, 1], [], []>} : vector<2x128xf32>, vector<128x128xf32>, vector<2x128xf32> -> vector<2x128xf32>
    %c0_16 = arith.constant 0 : index
    %c0_17 = arith.constant 0 : index
    %14 = vector.load %arg6[%c0_16, %c0_17] : memref<128x128xf32, #tpu.memory_space<vmem>>, vector<128x128xf32>
    %cst_18 = arith.constant dense<0.000000e+00> : vector<2x128xf32>
    %15 = tpu.matmul %5, %14, %cst_18 {dimension_numbers = #tpu.dot_dimension_numbers<[1], [0], [0], [1], [0, 0, 1, 1], [], []>} : vector<2x128xf32>, vector<128x128xf32>, vector<2x128xf32> -> vector<2x128xf32>
    %c0_19 = arith.constant 0 : index
    %c0_20 = arith.constant 0 : index
    %16 = vector.load %arg7[%c0_19, %c0_20] : memref<128x128xf32, #tpu.memory_space<vmem>>, vector<128x128xf32>
    %cst_21 = arith.constant dense<0.000000e+00> : vector<2x128xf32>
    %17 = tpu.matmul %5, %16, %cst_21 {dimension_numbers = #tpu.dot_dimension_numbers<[1], [0], [0], [1], [0, 0, 1, 1], [], []>} : vector<2x128xf32>, vector<128x128xf32>, vector<2x128xf32> -> vector<2x128xf32>
    %18 = arith.addf %7, %13 : vector<2x128xf32>
    %c0_22 = arith.constant 0 : index
    %c0_23 = arith.constant 0 : index
    %19 = vector.load %arg8[%c0_22, %c0_23] : memref<1x128xf32, #tpu.memory_space<vmem>>, vector<1x128xf32>
    %20 = vector.broadcast %19 : vector<1x128xf32> to vector<2x128xf32>
    %21 = arith.addf %18, %20 : vector<2x128xf32>
    %22 = arith.negf %21 : vector<2x128xf32>
    %23 = math.exp %22 : vector<2x128xf32>
    %cst_24 = arith.constant 1.000000e+00 : f32
    %24 = vector.broadcast %cst_24 : f32 to vector<2x128xf32>
    %25 = arith.addf %24, %23 : vector<2x128xf32>
    %26 = arith.divf %24, %25 : vector<2x128xf32>
    %27 = arith.addf %9, %15 : vector<2x128xf32>
    %c0_25 = arith.constant 0 : index
    %c0_26 = arith.constant 0 : index
    %28 = vector.load %arg9[%c0_25, %c0_26] : memref<1x128xf32, #tpu.memory_space<vmem>>, vector<1x128xf32>
    %29 = vector.broadcast %28 : vector<1x128xf32> to vector<2x128xf32>
    %30 = arith.addf %27, %29 : vector<2x128xf32>
    %31 = arith.negf %30 : vector<2x128xf32>
    %32 = math.exp %31 : vector<2x128xf32>
    %cst_27 = arith.constant 1.000000e+00 : f32
    %33 = vector.broadcast %cst_27 : f32 to vector<2x128xf32>
    %34 = arith.addf %33, %32 : vector<2x128xf32>
    %35 = arith.divf %33, %34 : vector<2x128xf32>
    %c0_28 = arith.constant 0 : index
    %c0_29 = arith.constant 0 : index
    %36 = vector.load %arg10[%c0_28, %c0_29] : memref<1x128xf32, #tpu.memory_space<vmem>>, vector<1x128xf32>
    %37 = vector.broadcast %36 : vector<1x128xf32> to vector<2x128xf32>
    %38 = arith.addf %11, %37 : vector<2x128xf32>
    %c0_30 = arith.constant 0 : index
    %c0_31 = arith.constant 0 : index
    %39 = vector.load %arg11[%c0_30, %c0_31] : memref<1x128xf32, #tpu.memory_space<vmem>>, vector<1x128xf32>
    %40 = vector.broadcast %39 : vector<1x128xf32> to vector<2x128xf32>
    %41 = arith.addf %17, %40 : vector<2x128xf32>
    %42 = arith.mulf %26, %41 : vector<2x128xf32>
    %43 = arith.addf %38, %42 : vector<2x128xf32>
    %44 = math.tanh %43 : vector<2x128xf32>
    %cst_32 = arith.constant 1.000000e+00 : f32
    %45 = vector.broadcast %cst_32 : f32 to vector<2x128xf32>
    %46 = arith.subf %45, %35 : vector<2x128xf32>
    %47 = arith.mulf %46, %44 : vector<2x128xf32>
    %48 = arith.mulf %35, %5 : vector<2x128xf32>
    %49 = arith.addf %47, %48 : vector<2x128xf32>
    %c0_33 = arith.constant 0 : index
    %c0_34 = arith.constant 0 : index
    %50 = vector.load %arg13[%c0_33, %c0_34] : memref<2x128xf32, #tpu.memory_space<vmem>>, vector<2x128xf32>
    tpu.vector_store %arg13[%c0_33, %c0_34], %49 {strides = array<i32>} : memref<2x128xf32, #tpu.memory_space<vmem>>, vector<2x128xf32>,
    %c0_35 = arith.constant 0 : index
    %c0_36 = arith.constant 0 : index
    %c0_37 = arith.constant 0 : index
    %51 = vector.load %arg12[%c0_35, %c0_36, %c0_37] : memref<1x2x128xf32, #tpu.memory_space<vmem>>, vector<1x2x128xf32>
    %52 = vector.shape_cast %51 : vector<1x2x128xf32> to vector<2x128xf32>
    %53 = vector.shape_cast %49 : vector<2x128xf32> to vector<1x2x128xf32>
    tpu.vector_store %arg12[%c0_35, %c0_36, %c0_37], %53 {strides = array<i32>} : memref<1x2x128xf32, #tpu.memory_space<vmem>>, vector<1x2x128xf32>,
    return
  }
  func.func @transform_0(%arg0: i32) -> (i32, i32, i32) {
    %c0_i32 = arith.constant 0 : i32
    %c0_i32_0 = arith.constant 0 : i32
    %c0_i32_1 = arith.constant 0 : i32
    return %arg0, %c0_i32, %c0_i32_0 : i32, i32, i32
  }
  func.func @transform_1(%arg0: i32) -> (i32, i32) {
    %c0_i32 = arith.constant 0 : i32
    %c0_i32_0 = arith.constant 0 : i32
    %c0_i32_1 = arith.constant 0 : i32
    return %c0_i32, %c0_i32_0 : i32, i32
  }
  func.func @transform_2(%arg0: i32) -> (i32, i32) {
    %c0_i32 = arith.constant 0 : i32
    %c0_i32_0 = arith.constant 0 : i32
    %c0_i32_1 = arith.constant 0 : i32
    return %c0_i32, %c0_i32_0 : i32, i32
  }
  func.func @transform_3(%arg0: i32) -> (i32, i32) {
    %c0_i32 = arith.constant 0 : i32
    %c0_i32_0 = arith.constant 0 : i32
    %c0_i32_1 = arith.constant 0 : i32
    return %c0_i32, %c0_i32_0 : i32, i32
  }
  func.func @transform_4(%arg0: i32) -> (i32, i32) {
    %c0_i32 = arith.constant 0 : i32
    %c0_i32_0 = arith.constant 0 : i32
    %c0_i32_1 = arith.constant 0 : i32
    return %c0_i32, %c0_i32_0 : i32, i32
  }
  func.func @transform_5(%arg0: i32) -> (i32, i32) {
    %c0_i32 = arith.constant 0 : i32
    %c0_i32_0 = arith.constant 0 : i32
    %c0_i32_1 = arith.constant 0 : i32
    return %c0_i32, %c0_i32_0 : i32, i32
  }
  func.func @transform_6(%arg0: i32) -> (i32, i32) {
    %c0_i32 = arith.constant 0 : i32
    %c0_i32_0 = arith.constant 0 : i32
    %c0_i32_1 = arith.constant 0 : i32
    return %c0_i32, %c0_i32_0 : i32, i32
  }
  func.func @transform_7(%arg0: i32) -> (i32, i32) {
    %c0_i32 = arith.constant 0 : i32
    %c0_i32_0 = arith.constant 0 : i32
    %c0_i32_1 = arith.constant 0 : i32
    return %c0_i32, %c0_i32_0 : i32, i32
  }
  func.func @transform_8(%arg0: i32) -> (i32, i32) {
    %c0_i32 = arith.constant 0 : i32
    %c0_i32_0 = arith.constant 0 : i32
    %c0_i32_1 = arith.constant 0 : i32
    return %c0_i32, %c0_i32_0 : i32, i32
  }
  func.func @transform_9(%arg0: i32) -> (i32, i32) {
    %c0_i32 = arith.constant 0 : i32
    %c0_i32_0 = arith.constant 0 : i32
    %c0_i32_1 = arith.constant 0 : i32
    return %c0_i32, %c0_i32_0 : i32, i32
  }
  func.func @transform_10(%arg0: i32) -> (i32, i32) {
    %c0_i32 = arith.constant 0 : i32
    %c0_i32_0 = arith.constant 0 : i32
    %c0_i32_1 = arith.constant 0 : i32
    return %c0_i32, %c0_i32_0 : i32, i32
  }
  func.func @transform_11(%arg0: i32) -> (i32, i32, i32) {
    %c0_i32 = arith.constant 0 : i32
    %c0_i32_0 = arith.constant 0 : i32
    %c0_i32_1 = arith.constant 0 : i32
    return %arg0, %c0_i32, %c0_i32_0 : i32, i32, i32
  }
  func.func @transform_12(%arg0: i32) -> (i32, i32) {
    %c0_i32 = arith.constant 0 : i32
    %c0_i32_0 = arith.constant 0 : i32
    %c0_i32_1 = arith.constant 0 : i32
    return %c0_i32, %c0_i32_0 : i32, i32
  }
}

</mosaic_0001>

<bundles_post_ra>
// kernel: encoder_forward.1
= control target key start
LH: loop header
LB: loop body
LE: loop exit
PB: predicated region body
PF: predicated region fallthrough
CT: control target
= control target key end

     0   :  { %s1355_s0 = inlined_call_operand.vmem [shape: f32[8,2,4], index: 0, kind: input, shape index: {}]   ;;  %s1356_s1 = inlined_call_operand.vmem [shape: f32[4,128], index: 1, kind: input, shape index: {}]   ;;  %s1357_s2 = inlined_call_operand.vmem [shape: f32[4,128], index: 2, kind: input, shape index: {}]   ;;  %s1358_s3 = inlined_call_operand.vmem [shape: f32[4,128], index: 3, kind: input, shape index: {}]   ;;  %s1359_s4 = inlined_call_operand.hbm [shape: f32[128,128], index: 4, kind: input, shape index: {}]   ;;  %s1360_s5 = inlined_call_operand.hbm [shape: f32[128,128], index: 5, kind: input, shape index: {}]   ;;  %s1361_s6 = inlined_call_operand.hbm [shape: f32[128,128], index: 6, kind: input, shape index: {}]   ;;  %s1362_s7 = inlined_call_operand.vmem [shape: f32[1,128], index: 7, kind: input, shape index: {}]   ;;  %s1363_s8 = inlined_call_operand.vmem [shape: f32[1,128], index: 8, kind: input, shape index: {}]   ;;  %s1364_s9 = inlined_call_operand.vmem [shape: f32[1,128], index: 9, kind: input, shape index: {}]   ;;  %s1365_s10 = inlined_call_operand.vmem [shape: f32[1,128], index: 10, kind: input, shape index: {}]   ;;  %s1366_s11 = inlined_call_operand.hbm [shape: f32[8,2,128], index: 11, kind: output, shape index: {0}]   ;;  %s1367_s12 = inlined_call_operand.vmem [shape: f32[2,128], index: 12, kind: output, shape index: {1}]  }
   0x1   :  { %1372 = sst [smem:[#allocation16_spill]] %s1359_s4 }
   0x2   :  { %1373 = sst [smem:[#allocation17_spill]] %s1360_s5 }
   0x3   :  { %18 = vsyncpa [#allocation3], 0 }
   0x4   :  { %19 = vsyncpa [#allocation6], 0 }
   0x5   :  { %20 = vsyncpa [#allocation4], 0 }
   0x6   :  { %22 = vsyncpa [#allocation4 + $0x1], 0  ;;  %s1171_s21 = smov 0   ;;  %s1173_s22 = smov 0  }
   0x7   :  { %s1175_s23 = smov 0   ;;  %s1177_s24 = smov 0  }
   0x8 LB: > { %1374 = sst [smem:[#allocation12_spill]] %s1094_s23  ;;  %s1192_s25 = sadd.s32 4294967295, %s1098_s24   ;;  %s1098_s24 = sphi %s1177_s24, %s1385_s24   ;;  %s1094_s23 = sphi %s1175_s23, %s1387_s23   ;;  %s1090_s22 = sphi %s1173_s22, %s1389_s22   ;;  %s1086_s21 = sphi %s1171_s21, %s1388_s21  }
   0x9   : > { %s826_s26 = sadd.s32 4294967294, %s1098_s24   ;;  %s1196_s27 = sadd.s32 1, %s1098_s24  }
   0xa   : > { %1375 = sst [smem:[#allocation13_spill]] %s1196_s27  ;;  %s271_s28 = sadd.s32 1, %s1094_s23 }
   0xb   : > { %s268_s29 = ssub.s32 %s1098_s24, %s1196_s27  ;;  %p281_p0 = scmp.ne.s32.totalorder %s1094_s23, %s1090_s22 }
   0xc   : > { %p269_p1 = scmp.eq.s32.totalorder %s268_s29, 0  ;;  %p282_p2 = scmp.eq.s32.totalorder %s1192_s25, 7 }
   0xd   : > { %p287_p3 = scmp.ne.s32.totalorder %s1090_s22, %s1086_s21  ;;  %p288_p4 = scmp.eq.s32.totalorder %s826_s26, 7 }
   0xe   : > { %s1207_s30 = scalar_select %p269_p1, %s1094_s23, %s271_s28  }
   0xf   : > { %p1209_p5 = por %p282_p2, %p281_p0  ;;  %p1213_p6 = por %p288_p4, %p287_p3 }
  0x10   : > { %1376 = sst [smem:[#allocation14_spill]] %s1207_s30  ;;  %p827_p7 = scmp.ge.s32.totalorder %s1098_s24, 1 }
  0x11   : > { %s1378_s14 = scalar_select %p1213_p6, 1, 0 }
  0x12   : > { %p316_p8 = scmp.lt.s32.totalorder %s1098_s24, 9  ;;  %p828_p9 = scmp.ne.s32.totalorder %s1192_s25, 0 }
  0x13   : > { %1379 = sst [smem:[#allocation15_spill]] %s1378_s14  ;;  %p879_p10 = scmp.eq.s32.totalorder %s1192_s25, 0 }
  0x14   : > { %p1221_p11 = pnand %p827_p7, %p316_p8  ;;  %s1381_s5 = sld [smem:[#allocation17_spill]] }
  0x15   : > { %s1382_s4 = sld [smem:[#allocation16_spill]]  ;;  %s1100_s29 = smov [#allocation5]  }
  0x16   : > { %p865_p12 = pneg %p1221_p11  ;;  %s352_s30 = sshll.u32 %s1100_s29, 4  ;;  %s353_s30 = int_to_ptr.vmem [resolvable:$true] %s352_s30 }
  0x17   : > { %s1101_s16 = smov 128   ;;  %s1102_s17 = smov 8  }
  0x18   : > { %p1235_p13 = pnand %p879_p10, %p865_p12  ;;  %s1104_s27 = smov [#allocation7]  }
  0x19   : > { %s366_s14 = sshll.u32 %s1104_s27, 4  ;;  %s367_s14 = int_to_ptr.vmem [resolvable:$true] %s366_s14 }
  0x1a   : > { %s350_s18 = sshll.u32 %s1381_s5, 4  ;;  %s1103_s5 = smov [#allocation2]   ;;  %s351_s18 = int_to_ptr.hbm [resolvable:$true] %s350_s18 }
  0x1b   : > { %s336_s26 = sshll.u32 %s1382_s4, 4  ;;  %s338_s23 = sshll.u32 %s1103_s5, 4  ;;  %s337_s26 = int_to_ptr.hbm [resolvable:$true] %s336_s26  ;;  %s339_s23 = int_to_ptr.vmem [resolvable:$true] %s338_s23 }
  0x1c   : > { %871 = dma.hbm_to_vmem [thread:$0]  (!%p1235_p13), %s351_s18, 2048, %s353_s30, [#allocation6], %s1101_s16, %s1101_s16, %s1102_s17  }
  0x1d   : > { %s364_s4 = sshll.u32 %s1361_s6, 4  ;;  %401 = sbr.rel (%p1221_p11) target bundleno = 254 (0xfe), region = 64  ;;  %s365_s4 = int_to_ptr.hbm [resolvable:$true] %s364_s4 }
  0x1e   : > { %868 = dma.hbm_to_vmem [thread:$0]  (!%p1235_p13), %s337_s26, 2048, %s339_s23, [#allocation3], %s1101_s16, %s1101_s16, %s1102_s17  }
  0x1f   : > { %874 = dma.hbm_to_vmem [thread:$0]  (!%p1235_p13), %s365_s4, 2048, %s367_s14, [#allocation6], %s1101_s16, %s1101_s16, %s1102_s17  }
  0x22   : > { %1073 = dma.done.wait (%p879_p10), [#allocation3], 2048  }
  0x23   : > { %1075 = vsyncadd (%p879_p10), [#allocation3], 4294965248 }
  0x24   : > { %1077 = dma.done.wait (%p879_p10), [#allocation6], 4096  }
  0x25   : > { %1079 = vsyncadd (%p879_p10), [#allocation6], 4294963200  ;;  %s448_s4 = sand.u32 1, %s1090_s22   ;;  %p453_p0 = scmp.lt.s32.totalorder %s1192_s25, 7 }
  0x26   : > { %s1262_s5 = sshll.u32 %s448_s4, 1  ;;  %460 = sbr.rel (%p828_p9) target bundleno = 45 (0x2d), region = 80 }
  0x27   : > { %s454_s23 = scalar_select %p453_p0, %s1192_s25, 7 }
  0x28   : > { %s450_s18 = scalar_lea.vmem [#allocation8], %s1262_s5 }
  0x29   : > { %s837_s27 = sshll.u32 %s454_s23, 1 }
  0x2a   : > { %s456_s15 = scalar_lea.vmem %s1355_s0, %s837_s27 }
  0x2b   : > { %v1105_v0 = vmov 0.0  }
  0x2c   : > { %461 = vst [vmem:[%s1367_s12] sm:$0x3] %v1105_v0 }
  0x2d PF: > { %v482_v1 = vld [vmem:[#allocation2 + $0x78] sm:$0xff]  ;;  %v481_v3 = vld [vmem:[#allocation2 + $0x70] sm:$0xff]  ;;  %v480_v5 = vld [vmem:[#allocation2 + $0x68] sm:$0xff]  ;;  %vm559_vm0 = vcmask 1043456   ;;  %vm555_vm1 = vcmask 31744   ;;  %s848_s20 = sshll.u32 %s1192_s25, 1 }
  0x2e   : > { %v518_v2 = vld [vmem:[#allocation5 + $0x78] sm:$0xff]  ;;  %483 = vmatpush.msra.mxu0 %v482_v1  ;;  %v517_v4 = vld [vmem:[#allocation5 + $0x70] sm:$0xff]  ;;  %v516_v6 = vld [vmem:[#allocation5 + $0x68] sm:$0xff]  ;;  %s725_s30 = scalar_lea.hbm %s1366_s11, %s848_s20  ;;  %s727_s14 = sshll.u32 %s450_s18, 4  ;;  %s728_s14 = int_to_ptr.vmem [resolvable:$true] %s727_s14 }
  0x2f   : > { %519 = vmatpush.msra.mxu1 %v518_v2  ;;  %v479_v7 = vld [vmem:[#allocation2 + $0x60] sm:$0xff]  ;;  %v478_v9 = vld [vmem:[#allocation2 + $0x58] sm:$0xff]  ;;  %v477_v13 = vld [vmem:[#allocation2 + $0x50] sm:$0xff]  ;;  %s715_s25 = scalar_lea.sflag [#allocation4], %s448_s4  ;;  %s1048_s20 = scalar_lea.hbm %s1366_s11, 16 }
  0x30   : > { %484 = vmatpush.msra.mxu0 %v481_v3  ;;  %v515_v8 = vld [vmem:[#allocation5 + $0x60] sm:$0xff]  ;;  %v514_v10 = vld [vmem:[#allocation5 + $0x58] sm:$0xff]  ;;  %v513_v14 = vld [vmem:[#allocation5 + $0x50] sm:$0xff] }
  0x31   : > { %520 = vmatpush.msra.mxu1 %v517_v4  ;;  %v464_v11 = vld [vmem:[%s1356_s1] sm:$0xf]  ;;  %v554_v16 = vld [vmem:[#allocation7 + $0x78] sm:$0xff]  ;;  %v476_v17 = vld [vmem:[#allocation2 + $0x48] sm:$0xff] }
  0x32   : > { %485 = vmatpush.msra.mxu0 %v480_v5  ;;  %v1277_v12 = vld [vmem:[%s456_s15] sm:$0x3]  ;;  %839 = vmatpush.msk.msra.mxu2 %vm559_vm0, %v464_v11  ;;  %v512_v18 = vld [vmem:[#allocation5 + $0x48] sm:$0xff]  ;;  %v553_v19 = vld [vmem:[#allocation7 + $0x70] sm:$0xff]  ;;  %s729_s15 = sshll.u32 %s725_s30, 4  ;;  %s730_s15 = int_to_ptr.hbm [resolvable:$true] %s729_s15 }
  0x33   : > { %521 = vmatpush.msra.mxu1 %v516_v6  ;;  %v465_v15 = vld [vmem:[%s1357_s2] sm:$0xf]  ;;  %840 = vmatmul.msk.f32.vlgmr.msra.gmra.mxu2 %vm555_vm1, %v1277_v12  ;;  %v552_v20 = vld [vmem:[#allocation7 + $0x68] sm:$0xff]  ;;  %v474_v24 = vld [vmem:[#allocation2 + $0x38] sm:$0xff]  ;;  %s1042_s29 = sshra.s32 %s730_s15, 4  ;;  %s1043_s29 = int_to_ptr.hbm [resolvable:$true] %s1042_s29 }
  0x34   : > { %486 = vmatpush.msra.mxu0 %v479_v7  ;;  %685 = vmatpush.msra.mxu3 %v554_v16  ;;  %v475_v21 = vld [vmem:[#allocation2 + $0x40] sm:$0xff]  ;;  %v510_v25 = vld [vmem:[#allocation5 + $0x38] sm:$0xff]  ;;  %v473_v26 = vld [vmem:[#allocation2 + $0x30] sm:$0xff]  ;;  %s1044_s16 = scalar_lea.hbm %s1043_s29, 2  ;;  %p1049_p4 = scmp.lt.s32.totalorder %s1043_s29, %s1366_s11 }
  0x35   : > { %522 = vmatpush.msra.mxu1 %v515_v8  ;;  %v511_v22 = vld [vmem:[#allocation5 + $0x40] sm:$0xff]  ;;  %842 = vmatpush.msk.msrb.mxu2 %vm559_vm0, %v465_v15  ;;  %v550_v27 = vld [vmem:[#allocation7 + $0x58] sm:$0xff]  ;;  %v509_v28 = vld [vmem:[#allocation5 + $0x30] sm:$0xff]  ;;  %p1045_p1 = scmp.ne.s32.totalorder %s1043_s29, %s1044_s16  ;;  %p1050_p7 = scmp.lt.s32.totalorder %s1048_s20, %s1044_s16 }
  0x36   : > { %487 = vmatpush.msra.mxu0 %v478_v9  ;;  %686 = vmatpush.msra.mxu3 %v553_v19  ;;  %v551_v23 = vld [vmem:[#allocation7 + $0x60] sm:$0xff]  ;;  %v472_v29 = vld [vmem:[#allocation2 + $0x28] sm:$0xff]  ;;  %v549_v31 = vld [vmem:[#allocation7 + $0x50] sm:$0xff] }
  0x37   : > { %523 = vmatpush.msra.mxu1 %v514_v10  ;;  %v508_v30 = vld [vmem:[#allocation5 + $0x28] sm:$0xff]  ;;  %v466_v32 = vld [vmem:[%s1358_s3] sm:$0xf]  ;;  %v470_v37 = vld [vmem:[#allocation2 + $0x18] sm:$0xff]  ;;  %p1046_p2 = pnand %p1045_p1, %p1209_p5  ;;  %p1051_p8 = por %p1050_p7, %p1049_p4 }
  0x38   : > { %488 = vmatpush.msra.mxu0 %v477_v13  ;;  %687 = vmatpush.msra.mxu3 %v552_v20  ;;  %v548_v33 = vld [vmem:[#allocation7 + $0x48] sm:$0xff]  ;;  %v471_v34 = vld [vmem:[#allocation2 + $0x20] sm:$0xff]  ;;  %v506_v38 = vld [vmem:[#allocation5 + $0x18] sm:$0xff] }
  0x39   : > { %524 = vmatpush.msra.mxu1 %v513_v14  ;;  %v507_v35 = vld [vmem:[#allocation5 + $0x20] sm:$0xff]  ;;  %845 = vmatpush.msk.msra.mxu2 %vm559_vm0, %v466_v32  ;;  %v546_v39 = vld [vmem:[#allocation7 + $0x38] sm:$0xff]  ;;  %v469_v40 = vld [vmem:[#allocation2 + $0x10] sm:$0xff]  ;;  %p1047_p3 = pneg %p1046_p2 }
  0x3a   : > { %489 = vmatpush.msra.mxu0 %v476_v17  ;;  %688 = vmatpush.msra.mxu3 %v551_v23  ;;  %v547_v36 = vld [vmem:[#allocation7 + $0x40] sm:$0xff]  ;;  %v505_v41 = vld [vmem:[#allocation5 + $0x10] sm:$0xff]  ;;  %v468_v43 = vld [vmem:[#allocation2 + $0x8] sm:$0xff] }
  0x3b   : > { %525 = vmatpush.msra.mxu1 %v512_v18  ;;  %843 = vmatmul.msk.f32.vlgmr.msrb.gmra.mxu2 %vm555_vm1, %v1277_v12  ;;  %v545_v42 = vld [vmem:[#allocation7 + $0x30] sm:$0xff]  ;;  %v504_v44 = vld [vmem:[#allocation5 + $0x8] sm:$0xff]  ;;  %v467_v46 = vld [vmem:[#allocation2] sm:$0xff]  ;;  %p1052_p9 = pnand %p1051_p8, %p1047_p3 }
  0x3c   : > { %490 = vmatpush.msra.mxu0 %v475_v21  ;;  %689 = vmatpush.msra.mxu3 %v550_v27  ;;  %v544_v45 = vld [vmem:[#allocation7 + $0x28] sm:$0xff]  ;;  %v503_v47 = vld [vmem:[#allocation5] sm:$0xff]  ;;  %v542_v50 = vld [vmem:[#allocation7 + $0x18] sm:$0xff] }
  0x3d   : > { %526 = vmatpush.msra.mxu1 %v511_v22  ;;  %v1297_v48 = vld [vmem:[%s1367_s12] sm:$0x3]  ;;  %v541_v51 = vld [vmem:[#allocation7 + $0x10] sm:$0xff]  ;;  %v540_v52 = vld [vmem:[#allocation7 + $0x8] sm:$0xff] }
  0x3e   : > { %491 = vmatpush.msra.mxu0 %v474_v24  ;;  %690 = vmatpush.msra.mxu3 %v549_v31  ;;  %v543_v49 = vld [vmem:[#allocation7 + $0x20] sm:$0xff] }
  0x3f   : > { %527 = vmatpush.msra.mxu1 %v510_v25  ;;  %v539_v53 = vld [vmem:[#allocation7] sm:$0xff] }
  0x40   : > { %492 = vmatpush.msra.mxu0 %v473_v26  ;;  %691 = vmatpush.msra.mxu3 %v548_v33  ;;  %v924_v56 = vld [vmem:[%s1362_s7] ss:$0 sm:$0xff] }
  0x41   : > { %528 = vmatpush.msra.mxu1 %v509_v28  ;;  %v925_v57 = vld [vmem:[%s1363_s8] ss:$0 sm:$0xff] }
  0x42   : > { %493 = vmatpush.msra.mxu0 %v472_v29  ;;  %692 = vmatpush.msra.mxu3 %v547_v36  ;;  %v926_v11 = vld [vmem:[%s1365_s10] ss:$0 sm:$0xff] }
  0x43   : > { %529 = vmatpush.msra.mxu1 %v508_v30  ;;  %846 = vmatmul.msk.f32.vlgmr.msra.gmra.mxu2 %vm555_vm1, %v1277_v12  ;;  %v927_v17 = vld [vmem:[%s1364_s9] ss:$0 sm:$0xff] }
  0x44   : > { %494 = vmatpush.msra.mxu0 %v471_v34  ;;  %693 = vmatpush.msra.mxu3 %v546_v39 }
  0x45   : > { %530 = vmatpush.msra.mxu1 %v507_v35 }
  0x46   : > { %495 = vmatpush.msra.mxu0 %v470_v37  ;;  %694 = vmatpush.msra.mxu3 %v545_v42 }
  0x47   : > { %531 = vmatpush.msra.mxu1 %v506_v38 }
  0x48   : > { %496 = vmatpush.msra.mxu0 %v469_v40  ;;  %695 = vmatpush.msra.mxu3 %v544_v45 }
  0x49   : > { %532 = vmatpush.msra.mxu1 %v505_v41 }
  0x4a   : > { %497 = vmatpush.msra.mxu0 %v468_v43  ;;  %696 = vmatpush.msra.mxu3 %v543_v49 }
  0x4b   : > { %533 = vmatpush.msra.mxu1 %v504_v44 }
  0x4c   : > { %498 = vmatpush.msra.mxu0 %v467_v46  ;;  %697 = vmatpush.msra.mxu3 %v542_v50 }
  0x4d   : > { %534 = vmatpush.msra.mxu1 %v503_v47  ;;  %499 = vmatmul.f32.vlgmr.msra.gmra.mxu0 %v1297_v48 }
  0x4e   : > { %535 = vmatmul.f32.vlgmr.msra.gmra.mxu1 %v1297_v48  ;;  %698 = vmatpush.msra.mxu3 %v541_v51 }
  0x50   : > { %699 = vmatpush.msra.mxu3 %v540_v52 }
  0x52   : > { %700 = vmatpush.msra.mxu3 %v539_v53 }
  0x53   : > { %701 = vmatmul.f32.vlgmr.msra.gmra.mxu3 %v1297_v48 }
  0xb6   : > { %v580_v54 = vpop.f32.mrf.mxu2 }
  0xbe   : > { %v627_v55 = vpop.f32.mrf.mxu2 }
  0xc6   : > { %v678_v18 = vpop.f32.mrf.mxu2 }
  0xc7   : > { %v679_v24 = vadd.f32 %v927_v17, %v678_v18 }
  0xca   : > { %v500_v58 = vpop.f32.mrf.mxu0 }
  0xcb   : > { %v536_v59 = vpop.f32.mrf.mxu1  ;;  %v581_v60 = vadd.f32 %v580_v54, %v500_v58 }
  0xcc   : > { %v628_v61 = vadd.f32 %v627_v55, %v536_v59 }
  0xcd   : > { %v587_v62 = vadd.f32 %v924_v56, %v581_v60 }
  0xce   : > { %v634_v63 = vadd.f32 %v925_v57, %v628_v61 }
  0xcf   : > { %v841_v0 = vmul.f32 -1.442695, %v587_v62 }
  0xd0   : > { %v844_v1 = vmul.f32 -1.442695, %v634_v63 }
  0xd1   : > { %928 = vpow2.f32 %v841_v0 }
  0xd2   : > { %930 = vpow2.f32 %v844_v1 }
  0xd6   : > { %v702_v14 = vpop.f32.mrf.mxu3 }
  0xd7   : > { %v929_v2 = vpop.eup %928  ;;  %v703_v21 = vadd.f32 %v926_v11, %v702_v14 }
  0xd8   : > { %v931_v3 = vpop.eup %930  ;;  %v591_v4 = vadd.f32 1.0, %v929_v2 }
  0xd9   : > { %v638_v5 = vadd.f32 1.0, %v931_v3 }
  0xda   : > { %932 = vrcp.f32 %v591_v4  ;;  %v603_v13 = vand.u32 2147483648, %v591_v4  ;;  %v601_v16 = vand.u32 2147483647, %v591_v4  ;;  %vm597_vm3 = vweird.f32 %v591_v4 }
  0xdb   : > { %934 = vrcp.f32 %v638_v5  ;;  %vm644_vm6 = vweird.f32 %v638_v5  ;;  %v650_v28 = vand.u32 2147483648, %v638_v5  ;;  %v648_v29 = vand.u32 2147483647, %v638_v5 }
  0xdc   : > { %v604_v22 = vor.u32 1.1754944e-38, %v603_v13  ;;  %vm602_vm5 = vcmp.eq.f32.partialorder %v601_v16, 8.507059e+37 }
  0xdd   : > { %v651_v32 = vor.u32 1.1754944e-38, %v650_v28  ;;  %vm649_vm9 = vcmp.eq.f32.partialorder %v648_v29, 8.507059e+37 }
  0xe0   : > { %v933_v6 = vpop.eup %932 }
  0xe1   : > { %v935_v7 = vpop.eup %934  ;;  %v593_v8 = vmul.f32 %v933_v6, %v591_v4  ;;  %vm598_vm2 = vweird.f32 %v933_v6 }
  0xe2   : > { %v640_v9 = vmul.f32 %v935_v7, %v638_v5  ;;  %vm599_vm4 = vmor %vm597_vm3, %vm598_vm2  ;;  %vm645_vm7 = vweird.f32 %v935_v7 }
  0xe3   : > { %v594_v10 = vsub.f32 1.0, %v593_v8  ;;  %vm646_vm8 = vmor %vm644_vm6, %vm645_vm7 }
  0xe4   : > { %v641_v12 = vsub.f32 1.0, %v640_v9 }
  0xe5   : > { %v595_v15 = vmul.f32 %v933_v6, %v594_v10 }
  0xe6   : > { %v642_v19 = vmul.f32 %v935_v7, %v641_v12 }
  0xe7   : > { %v596_v20 = vadd.f32 %v933_v6, %v595_v15 }
  0xe8   : > { %v643_v26 = vadd.f32 %v935_v7, %v642_v19 }
  0xe9   : > { %v600_v23 = vsel %vm599_vm4, %v933_v6, %v596_v20 }
  0xea   : > { %v605_v25 = vsel %vm602_vm5, %v604_v22, %v600_v23  ;;  %v647_v31 = vsel %vm646_vm8, %v935_v7, %v643_v26 }
  0xeb   : > { %v705_v27 = vmul.f32 %v703_v21, %v605_v25  ;;  %v652_v33 = vsel %vm649_vm9, %v651_v32, %v647_v31 }
  0xec   : > { %v708_v34 = vsub.f32 1.0, %v652_v33  ;;  %v710_v37 = vmul.f32 %v652_v33, %v1297_v48 }
  0xed   : > { %v706_v30 = vadd.f32 %v705_v27, %v679_v24 }
  0xef   : > { %936 = vtanh.f32 %v706_v30 }
  0xf5   : > { %v937_v35 = vpop.eup %936 }
  0xf6   : > { %v709_v36 = vmul.f32 %v937_v35, %v708_v34 }
  0xf8   : > { %v711_v38 = vadd.f32 %v710_v37, %v709_v36 }
  0xfa   : > { %712 = vst [vmem:[%s1367_s12] sm:$0x3] %v711_v38 }
  0xfb   : > { %713 = vst [vmem:[%s450_s18] sm:$0x3] %v711_v38 }
  0xfc   : > { %1055 = shalt.err (!%p1052_p9)
}
  0xfd   : > { %863 = dma.vmem_to_hbm [thread:$0]  (%p1209_p5), %s728_s14, 32, %s730_s15, %s715_s25  }
  0xfe PF: > { %p885_p10 = scmp.ge.s32.totalorder %s1098_s24, 2  ;;  %s747_s5 = sand.u32 1, %s1086_s21  }
  0xff   : > { %s748_s18 = scalar_lea.sflag [#allocation4], %s747_s5 }
 0x100   : > { %p876_p11 = pnand %p885_p10, %p1213_p6 }
 0x102   : > { %p877_p12 = pneg %p876_p11 }
 0x104   : > { %1081 = dma.done.wait (%p877_p12), %s748_s18, 32  }
 0x105   : > { %1083 = vsyncadd (%p877_p12), %s748_s18, 4294967264  ;;  %s1385_s24 = sld [smem:[#allocation13_spill]]  ;;  %s1388_s21 = smov %s1090_s22 }
 0x106   : > { %s1386_s30 = sld [smem:[#allocation12_spill]] }
 0x107   : > { %s1387_s23 = sld [smem:[#allocation14_spill]] }
 0x10b   : > { %p25_p13 = scmp.ge.s32.totalorder %s1385_s24, 10  }
 0x10c   : > { %s1389_s22 = smov %s1386_s30 }
 0x10d   :  { %27 = sbr.rel (!%p25_p13) target bundleno = 8 (0x8), region = 124 }
 0x112   :  { %754 = vsyncpa [#allocation3], 1 }
 0x113   :  { %756 = vsyncpa [#allocation3 + $0x1], 1 }
 0x114   :  { %757 = vsyncpa [#allocation6], 1 }
 0x115   :  { %758 = vsyncpa [#allocation4], 1 }
 0x116   :  { %760 = vsyncpa [#allocation4 + $0x1], 1 }

</bundles_post_ra>
